<compile_context>
chip_gen: v6e
topology: v6e:2x2x1
jax: 0.10.0
libtpu: 0.0.40
codegen_flags: <defaults>
</compile_context>

<pallas_src>
import jax
import jax.numpy as jnp
from jax.experimental import pallas as pl
from jax.experimental.pallas import tpu as pltpu


def _round_up(a, m):
    return ((a + m - 1) // m) * m


def _cdiv(a, b):
    return -(-a // b)


def _pick_row_tile(n, cap=4096):
    """Largest row tile <= cap (multiple of 8) such that the grid has >= 2
    steps when N allows it, preferring an even grid (v7x megacore balance)."""
    if n <= 8:
        return 8
    tile = min(cap, _round_up(_cdiv(n, 2), 8))
    grid_n = _cdiv(n, tile)
    if grid_n > 2 and grid_n % 2 == 1:
        grid_n += 1
        tile = _round_up(_cdiv(n, grid_n), 8)
    return tile


def nn1_kernel(x_ref, w1_ref, b1_ref, w2_ref, b2_ref, o_ref):
    # x_ref:  (TN, F)  f32 tile of input rows (cast to bf16 in-kernel)
    # w1_ref: (F, H)   bf16 dense1 weight (in, out), resident
    # b1_ref: (1, H)   f32 dense1 bias
    # w2_ref: (H, C)   bf16 dense2 weight, resident (no class padding)
    # b2_ref: (1, C)   f32 dense2 bias
    # o_ref:  (TN, C)  f32 log-probabilities
    x = x_ref[...].astype(w1_ref.dtype)  # in-kernel cast: free (mem-bound kernel)

    # dense1 on the MXU with f32 accumulation; bias + ReLU in f32.
    h = jnp.dot(x, w1_ref[...], preferred_element_type=jnp.float32) + b1_ref[...]
    h = jnp.maximum(h, 0.0)

    # dense2: bf16 operands into the MXU, f32 accumulate.
    logits = jnp.dot(h.astype(w2_ref.dtype), w2_ref[...],
                     preferred_element_type=jnp.float32) + b2_ref[...]

    # Numerically stable log_softmax over the class axis (f32).
    m = jnp.max(logits, axis=1, keepdims=True)
    shifted = logits - m
    lse = jnp.log(jnp.sum(jnp.exp(shifted), axis=1, keepdims=True))
    o_ref[...] = (shifted - lse).astype(o_ref.dtype)


def nn1_forward(x, w1, b1, w2, b2, *, row_tile=None, compute_dtype=jnp.bfloat16):
    n, f = x.shape
    hid = w1.shape[1]
    c = w2.shape[1]
    assert w1.shape == (f, hid) and b1.shape == (1, hid)
    assert w2.shape == (hid, c) and b2.shape == (1, c)

    tn = _round_up(row_tile if row_tile is not None else _pick_row_tile(n), 8)
    grid_n = pl.cdiv(n, tn)   # ragged last tile handled by Pallas masking

    # Only the (tiny, resident) weights are cast in the wrapper; x streams f32.
    w1_c = w1.astype(compute_dtype)
    w2_c = w2.astype(compute_dtype)
    b1_f = b1.astype(jnp.float32)
    b2_f = b2.astype(jnp.float32)

    cost = pl.CostEstimate(
        flops=2 * n * (f * hid + hid * c),
        transcendentals=n * (c + 1),
        bytes_accessed=(n * f + n * c) * 4 + (f * hid + hid * c) * 2 + (hid + c) * 4,
    )

    return pl.pallas_call(
        nn1_kernel,
        out_shape=jax.ShapeDtypeStruct((n, c), jnp.float32),
        grid_spec=pltpu.PrefetchScalarGridSpec(
            num_scalar_prefetch=0,
            grid=(grid_n,),
            in_specs=[
                pl.BlockSpec((tn, f), lambda i: (i, 0)),      # x tile (streamed)
                pl.BlockSpec((f, hid), lambda i: (0, 0)),     # w1 (resident)
                pl.BlockSpec((1, hid), lambda i: (0, 0)),     # b1
                pl.BlockSpec((hid, c), lambda i: (0, 0)),     # w2 (resident)
                pl.BlockSpec((1, c), lambda i: (0, 0)),       # b2
            ],
            # Last dim == full array dim (C) -> legal block, 8x fewer output
            # bytes than the old 128-lane-padded f32 slab, and no post slice.
            out_specs=pl.BlockSpec((tn, c), lambda i: (i, 0)),
        ),
        compiler_params=pltpu.CompilerParams(
            # Row axis is embarrassingly parallel -> shards across v7x's two
            # TensorCores; no-op on single-TC v5e/v6e.
            dimension_semantics=("parallel",),
            # Working set at tn=4096 is < 4 MiB; 32 MiB fits every generation
            # (incl. v7x's 64 MiB physical VMEM) with plenty of headroom.
            vmem_limit_bytes=32 * 1024 * 1024,
        ),
        cost_estimate=cost,
    )(x.astype(jnp.float32), w1_c, b1_f, w2_c, b2_f)


def init_params(key, num_node_features, num_classes, hidden=64):
    # Deterministic synthetic init (PyTorch-Linear-style uniform bounds).
    k1, k2, k3, k4 = jax.random.split(key, 4)
    bound1 = 1.0 / jnp.sqrt(num_node_features)
    bound2 = 1.0 / jnp.sqrt(hidden)
    w1 = jax.random.uniform(k1, (num_node_features, hidden), jnp.float32,
                            -bound1, bound1)
    b1 = jax.random.uniform(k2, (1, hidden), jnp.float32, -bound1, bound1)
    w2 = jax.random.uniform(k3, (hidden, num_classes), jnp.float32,
                            -bound2, bound2)
    b2 = jax.random.uniform(k4, (1, num_classes), jnp.float32, -bound2, bound2)
    return w1, b1, w2, b2


if __name__ == "__main__":
    key = jax.random.PRNGKey(0)
    num_node_features = 32
    num_classes = 16
    n_nodes = 200   # deliberately not a multiple of the row tile (ragged tile)

    kx, kp = jax.random.split(key)
    x = jax.random.normal(kx, (n_nodes, num_node_features), jnp.float32)
    w1, b1, w2, b2 = init_params(kp, num_node_features, num_classes)

    fwd = jax.jit(nn1_forward)
    out = jax.block_until_ready(fwd(x, w1, b1, w2, b2))
    assert out.shape == (n_nodes, num_classes)

    # Reference with matching precision (bf16 operands, f32 accumulation).
    xb = x.astype(jnp.bfloat16)
    h_ref = jnp.maximum(
        jnp.dot(xb, w1.astype(jnp.bfloat16),
                preferred_element_type=jnp.float32) + b1, 0.0)
    logits_ref = jnp.dot(h_ref.astype(jnp.bfloat16), w2.astype(jnp.bfloat16),
                         preferred_element_type=jnp.float32) + b2
    ref = jax.nn.log_softmax(logits_ref, axis=1)
    assert jnp.allclose(out, ref, atol=1e-4, rtol=1e-4), \
        float(jnp.max(jnp.abs(out - ref)))

    # Loose sanity check against the full-f32 PyTorch-equivalent math.
    h32 = jnp.maximum(x @ w1 + b1, 0.0)
    ref32 = jax.nn.log_softmax(h32 @ w2 + b2, axis=1)
    assert jnp.allclose(out, ref32, atol=1e-1), \
        float(jnp.max(jnp.abs(out - ref32)))

    print("KERNEL_OK")
</pallas_src>

<mosaic_0001>
module attributes {stable_mosaic.version = 11 : i64} {
  func.func @nn1_kernel(%arg0: i32, %arg1: memref<104x32xf32, #tpu.memory_space<vmem>>, %arg2: memref<32x64xbf16, #tpu.memory_space<vmem>>, %arg3: memref<1x64xf32, #tpu.memory_space<vmem>>, %arg4: memref<64x16xbf16, #tpu.memory_space<vmem>>, %arg5: memref<1x16xf32, #tpu.memory_space<vmem>>, %arg6: memref<104x16xf32, #tpu.memory_space<vmem>>) attributes {dimension_semantics = [#tpu.dimension_semantics<parallel>], iteration_bounds = array<i64: 2>, scalar_prefetch = 0 : i64, scratch_operands = 0 : i64, tpu.core_type = #tpu.core_type<tc>, window_params = [{transform_indices = @transform_0, window_bounds = array<i64: 104, 32>}, {pipeline_mode = #tpu.pipeline_mode<synchronous>, transform_indices = @transform_1, window_bounds = array<i64: 32, 64>}, {pipeline_mode = #tpu.pipeline_mode<synchronous>, transform_indices = @transform_2, window_bounds = array<i64: 1, 64>}, {pipeline_mode = #tpu.pipeline_mode<synchronous>, transform_indices = @transform_3, window_bounds = array<i64: 64, 16>}, {pipeline_mode = #tpu.pipeline_mode<synchronous>, transform_indices = @transform_4, window_bounds = array<i64: 1, 16>}, {transform_indices = @transform_5, window_bounds = array<i64: 104, 16>}]} {
    %c0 = arith.constant 0 : index
    %c0_0 = arith.constant 0 : index
    %0 = vector.load %arg1[%c0, %c0_0] : memref<104x32xf32, #tpu.memory_space<vmem>>, vector<104x32xf32>
    %1 = arith.truncf %0 : vector<104x32xf32> to vector<104x32xbf16>
    %c0_1 = arith.constant 0 : index
    %c0_2 = arith.constant 0 : index
    %2 = vector.load %arg2[%c0_1, %c0_2] : memref<32x64xbf16, #tpu.memory_space<vmem>>, vector<32x64xbf16>
    %cst = arith.constant dense<0.000000e+00> : vector<104x64xf32>
    %3 = tpu.matmul %1, %2, %cst {dimension_numbers = #tpu.dot_dimension_numbers<[1], [0], [0], [1], [0, 0, 1, 1], [], []>} : vector<104x32xbf16>, vector<32x64xbf16>, vector<104x64xf32> -> vector<104x64xf32>
    %c0_3 = arith.constant 0 : index
    %c0_4 = arith.constant 0 : index
    %4 = vector.load %arg3[%c0_3, %c0_4] : memref<1x64xf32, #tpu.memory_space<vmem>>, vector<1x64xf32>
    %5 = vector.broadcast %4 : vector<1x64xf32> to vector<104x64xf32>
    %6 = arith.addf %3, %5 : vector<104x64xf32>
    %cst_5 = arith.constant 0.000000e+00 : f32
    %7 = vector.broadcast %cst_5 : f32 to vector<104x64xf32>
    %8 = arith.maximumf %6, %7 : vector<104x64xf32>
    %9 = arith.truncf %8 : vector<104x64xf32> to vector<104x64xbf16>
    %c0_6 = arith.constant 0 : index
    %c0_7 = arith.constant 0 : index
    %10 = vector.load %arg4[%c0_6, %c0_7] : memref<64x16xbf16, #tpu.memory_space<vmem>>, vector<64x16xbf16>
    %cst_8 = arith.constant dense<0.000000e+00> : vector<104x16xf32>
    %11 = tpu.matmul %9, %10, %cst_8 {dimension_numbers = #tpu.dot_dimension_numbers<[1], [0], [0], [1], [0, 0, 1, 1], [], []>} : vector<104x64xbf16>, vector<64x16xbf16>, vector<104x16xf32> -> vector<104x16xf32>
    %c0_9 = arith.constant 0 : index
    %c0_10 = arith.constant 0 : index
    %12 = vector.load %arg5[%c0_9, %c0_10] : memref<1x16xf32, #tpu.memory_space<vmem>>, vector<1x16xf32>
    %13 = vector.broadcast %12 : vector<1x16xf32> to vector<104x16xf32>
    %14 = arith.addf %11, %13 : vector<104x16xf32>
    %cst_11 = arith.constant dense<0xFF800000> : vector<104xf32>
    %15 = vector.multi_reduction <maximumf>, %14, %cst_11 [1] : vector<104x16xf32> to vector<104xf32>
    %16 = vector.shape_cast %15 : vector<104xf32> to vector<104x1xf32>
    %17 = vector.broadcast %16 : vector<104x1xf32> to vector<104x16xf32>
    %18 = arith.subf %14, %17 : vector<104x16xf32>
    %19 = math.exp %18 : vector<104x16xf32>
    %cst_12 = arith.constant dense<0.000000e+00> : vector<104xf32>
    %20 = vector.multi_reduction <add>, %19, %cst_12 [1] : vector<104x16xf32> to vector<104xf32>
    %21 = vector.shape_cast %20 : vector<104xf32> to vector<104x1xf32>
    %22 = math.log %21 : vector<104x1xf32>
    %23 = vector.broadcast %22 : vector<104x1xf32> to vector<104x16xf32>
    %24 = arith.subf %18, %23 : vector<104x16xf32>
    %c0_13 = arith.constant 0 : index
    %c0_14 = arith.constant 0 : index
    %25 = vector.load %arg6[%c0_13, %c0_14] : memref<104x16xf32, #tpu.memory_space<vmem>>, vector<104x16xf32>
    tpu.vector_store %arg6[%c0_13, %c0_14], %24 {strides = array<i32>} : memref<104x16xf32, #tpu.memory_space<vmem>>, vector<104x16xf32>,
    return
  }
  func.func @transform_0(%arg0: i32) -> (i32, i32) {
    %c0_i32 = arith.constant 0 : i32
    %c0_i32_0 = arith.constant 0 : i32
    return %arg0, %c0_i32 : i32, i32
  }
  func.func @transform_1(%arg0: i32) -> (i32, i32) {
    %c0_i32 = arith.constant 0 : i32
    %c0_i32_0 = arith.constant 0 : i32
    %c0_i32_1 = arith.constant 0 : i32
    return %c0_i32, %c0_i32_0 : i32, i32
  }
  func.func @transform_2(%arg0: i32) -> (i32, i32) {
    %c0_i32 = arith.constant 0 : i32
    %c0_i32_0 = arith.constant 0 : i32
    %c0_i32_1 = arith.constant 0 : i32
    return %c0_i32, %c0_i32_0 : i32, i32
  }
  func.func @transform_3(%arg0: i32) -> (i32, i32) {
    %c0_i32 = arith.constant 0 : i32
    %c0_i32_0 = arith.constant 0 : i32
    %c0_i32_1 = arith.constant 0 : i32
    return %c0_i32, %c0_i32_0 : i32, i32
  }
  func.func @transform_4(%arg0: i32) -> (i32, i32) {
    %c0_i32 = arith.constant 0 : i32
    %c0_i32_0 = arith.constant 0 : i32
    %c0_i32_1 = arith.constant 0 : i32
    return %c0_i32, %c0_i32_0 : i32, i32
  }
  func.func @transform_5(%arg0: i32) -> (i32, i32) {
    %c0_i32 = arith.constant 0 : i32
    %c0_i32_0 = arith.constant 0 : i32
    return %arg0, %c0_i32 : i32, i32
  }
}

</mosaic_0001>

<bundles_post_ra>
// kernel: nn1_forward.1
= control target key start
LH: loop header
LB: loop body
LE: loop exit
PB: predicated region body
PF: predicated region fallthrough
CT: control target
= control target key end

     0   :  { %s1407_s18 = smov 0   ;;  %s1409_s19 = smov 0   ;;  %s1809_s0 = inlined_call_operand.vmem [shape: f32[200,32], index: 0, kind: input, shape index: {}]   ;;  %s1810_s1 = inlined_call_operand.vmem [shape: bf16[32,64], index: 1, kind: input, shape index: {}]   ;;  %s1811_s2 = inlined_call_operand.vmem [shape: f32[1,64], index: 2, kind: input, shape index: {}]   ;;  %s1812_s3 = inlined_call_operand.vmem [shape: bf16[64,16], index: 3, kind: input, shape index: {}]   ;;  %s1813_s4 = inlined_call_operand.vmem [shape: f32[1,16], index: 4, kind: input, shape index: {}]   ;;  %s1814_s5 = inlined_call_operand.vmem [shape: f32[200,16], index: 5, kind: output, shape index: {}]  }
   0x1   :  { %s1411_s20 = smov 0  }
   0x2 LB: > { %s1420_s21 = sadd.s32 4294967295, %s1341_s20   ;;  %s1422_s22 = sadd.s32 1, %s1341_s20   ;;  %s1341_s20 = sphi %s1411_s20, %s1821_s20   ;;  %s1337_s19 = sphi %s1409_s19, %s1820_s19   ;;  %s1333_s18 = sphi %s1407_s18, %s1819_s18  }
   0x3   : > { %s129_s23 = ssub.s32 %s1341_s20, %s1422_s22  ;;  %s132_s24 = sadd.s32 1, %s1337_s19 }
   0x4   : > { %p130_p0 = scmp.eq.s32.totalorder %s129_s23, 0  ;;  %p142_p1 = scmp.ne.s32.totalorder %s1337_s19, %s1333_s18 }
   0x5   : > { %p143_p2 = scmp.eq.s32.totalorder %s1420_s21, 1  ;;  %p1008_p3 = scmp.ge.s32.totalorder %s1341_s20, 1 }
   0x6   : > { %s1430_s25 = scalar_select %p130_p0, %s1337_s19, %s132_s24  }
   0x7   : > { %p1432_p4 = por %p143_p2, %p142_p1  ;;  %p196_p5 = scmp.lt.s32.totalorder %s1341_s20, 3 }
   0x9   : > { %p197_p6 = pnand %p1008_p3, %p196_p5 }
   0xa   : > { %s1447_s6 = smul.u32 (!%p197_p6), 13, %s1420_s21  ;;  %s224_s30 = sand.u32 (!%p197_p6), 1, %s1333_s18  }
   0xb   : > { %200 = sbr.rel (%p197_p6) target bundleno = 839 (0x347), region = 40 }
   0xc   : > { %p232_p7 = scmp.lt.s32.totalorder (!%p197_p6), %s1447_s6, 24  ;;  %s1133_s7 = smul.u32 (!%p197_p6), 104, %s224_s30 }
   0xe   : > { %s1680_s8 = scalar_lea.vmem (!%p197_p6), [#allocation2], %s1133_s7  }
  0x10   : > { %v1225_v0 = vld [vmem:[%s1810_s1 + $0x8] sm:$0xff]   ;;  %v1375_v1 = vmov 0.0   ;;  %v1226_v2 = vld [vmem:[%s1810_s1] sm:$0xff]   ;;  %vm1376_vm0 = vmmov 0   ;;  %v1227_v3 = vld [vmem:[%s1812_s3 + $0x18] sm:$0xff]   ;;  %s233_s9 = scalar_select %p232_p7, %s1447_s6, 24 }
  0x11   : > { %1065 = vmatprep.subr.bf16.mxu0 %v1375_v1  ;;  %1097 = vmatprep.subr.bf16.mxu1 %v1375_v1  ;;  %vm290_vm1 = vcmask 261120   ;;  %v1228_v24 = vld [vmem:[%s1812_s3 + $0x10] sm:$0xff]   ;;  %v1229_v25 = vld [vmem:[%s1812_s3 + $0x8] sm:$0xff]   ;;  %v1230_v26 = vld [vmem:[%s1812_s3] sm:$0xff]   ;;  %vm459_vm2 = vcmask 523264   ;;  %vm569_vm3 = vcmask 130048  }
  0x12   : > { %1066 = vmatpush3.bf16.msra.mxu0 %v1225_v0  ;;  %1069 = vmatprep.mubr.msk.bf16.mxu0 %vm1376_vm0, %v1375_v1  ;;  %s1009_s10 = sshll.u32 %s233_s9, 3  ;;  %v1509_v27 = vld [vmem:[%s1811_s2] ss:$0 sm:$0xff]  ;;  %s747_s18 = ssub.s32 (%p1432_p4), 25, %s1447_s6 }
  0x13   : > { %1067 = vmatprep.subr.bf16.mxu0 %v1375_v1  ;;  %1105 = vmatprep.mubr.msk.bf16.mxu1 %vm1376_vm0, %v1375_v1  ;;  %s1461_s13 = scalar_lea.vmem %s1809_s0, %s1009_s10  ;;  %s1044_s9 = smul.u32 (%p1432_p4), 104, %s1420_s21 }
  0x14   : > { %1098 = vmatpush3.bf16.msra.mxu1 %v1227_v3  ;;  %v247_v4 = vld [vmem:[%s1461_s13] sm:$0xff]  ;;  %v248_v5 = vld [vmem:[%s1461_s13 + $0x8] sm:$0xff]  ;;  %v249_v7 = vld [vmem:[%s1461_s13 + $0x10] sm:$0xff]  ;;  %p748_p8 = scmp.lt.s32.totalorder (%p1432_p4), %s747_s18, 13 }
  0x15   : > { %1099 = vmatprep.subr.bf16.mxu1 %v1375_v1  ;;  %v260_v6 = vpack.c.bf16 %v248_v5, %v247_v4  ;;  %v250_v8 = vld [vmem:[%s1461_s13 + $0x18] sm:$0xff]  ;;  %v251_v10 = vld [vmem:[%s1461_s13 + $0x20] sm:$0xff]  ;;  %v252_v11 = vld [vmem:[%s1461_s13 + $0x28] sm:$0xff]  ;;  %s1727_s12 = scalar_lea.vmem (%p1432_p4), %s1814_s5, %s1044_s9  }
  0x16   : > { %1068 = vmatpush3.bf16.msra.mxu0 %v1226_v2  ;;  %v261_v9 = vpack.c.bf16 %v250_v8, %v249_v7  ;;  %v262_v12 = vpack.c.bf16 %v252_v11, %v251_v10  ;;  %v253_v13 = vld [vmem:[%s1461_s13 + $0x30] sm:$0xff]  ;;  %v254_v14 = vld [vmem:[%s1461_s13 + $0x38] sm:$0xff]  ;;  %v255_v16 = vld [vmem:[%s1461_s13 + $0x40] sm:$0xff] }
  0x17   : > { %v263_v15 = vpack.c.bf16 %v254_v14, %v253_v13  ;;  %v256_v17 = vld [vmem:[%s1461_s13 + $0x48] sm:$0xff]  ;;  %v257_v19 = vld [vmem:[%s1461_s13 + $0x50] sm:$0xff]  ;;  %v258_v20 = vld [vmem:[%s1461_s13 + $0x58] sm:$0xff] }
  0x18   : > { %v264_v18 = vpack.c.bf16 %v256_v17, %v255_v16  ;;  %v265_v21 = vpack.c.bf16 %v258_v20, %v257_v19  ;;  %v259_v22 = vld [vmem:[%s1461_s13 + $0x60] sm:$0xff]  ;;  %1100 = vmatpush3.bf16.msra.mxu1 %v1228_v24 }
  0x19   : > { %1070 = vmatmul.mubr.msk.bf16.vlgmr.msra.gmra.mxu0 %vm290_vm1, %v260_v6  ;;  %v266_v23 = vpack.c.bf16 %v259_v22, %v259_v22  ;;  %1101 = vmatprep.subr.bf16.mxu1 %v1375_v1 }
  0x1a   : > { %1073 = vmatprep.mubr.msk.bf16.mxu0 %vm1376_vm0, %v1375_v1 }
  0x1c   : > { %1102 = vmatpush3.bf16.msra.mxu1 %v1229_v25 }
  0x1d   : > { %1103 = vmatprep.subr.bf16.mxu1 %v1375_v1 }
  0x20   : > { %1104 = vmatpush3.bf16.msra.mxu1 %v1230_v26  ;;  %v1546_v26 = vld [vmem:[%s1813_s4] ss:$0 sm:$0xff] }
  0x21   : > { %1074 = vmatmul.mubr.msk.bf16.gmra.mxu0 %vm290_vm1, %v261_v9 }
  0x22   : > { %1077 = vmatprep.mubr.msk.bf16.mxu0 %vm1376_vm0, %v1375_v1 }
  0x29   : > { %1078 = vmatmul.mubr.msk.bf16.gmra.mxu0 %vm290_vm1, %v262_v12 }
  0x2a   : > { %1081 = vmatprep.mubr.msk.bf16.mxu0 %vm1376_vm0, %v1375_v1 }
  0x31   : > { %1082 = vmatmul.mubr.msk.bf16.gmra.mxu0 %vm290_vm1, %v263_v15 }
  0x32   : > { %1085 = vmatprep.mubr.msk.bf16.mxu0 %vm1376_vm0, %v1375_v1 }
  0x39   : > { %1086 = vmatmul.mubr.msk.bf16.gmra.mxu0 %vm290_vm1, %v264_v18 }
  0x3a   : > { %1089 = vmatprep.mubr.msk.bf16.mxu0 %vm1376_vm0, %v1375_v1 }
  0x41   : > { %1090 = vmatmul.mubr.msk.bf16.gmra.mxu0 %vm290_vm1, %v265_v21 }
  0x42   : > { %1093 = vmatprep.mubr.msk.bf16.mxu0 %vm1376_vm0, %v1375_v1 }
  0x49   : > { %1094 = vmatmul.mubr.msk.bf16.gmra.mxu0 %vm290_vm1, %v266_v23 }
  0xd9   : > { %v346_v28 = vpop.f32.mrf.mxu0 }
  0xda   : > { %v347_v30 = vadd.f32 %v1509_v27, %v346_v28 }
  0xdb   : > { %v1071_v29 = vpop.f32.mrf.mxu0 }
  0xdc   : > { %v400_v34 = vmax.f32 %v347_v30, 0.0 }
  0xdd   : > { %v349_v31 = vpop.f32.mrf.mxu0 }
  0xde   : > { %v350_v32 = vadd.f32 %v1509_v27, %v349_v31 }
  0xdf   : > { %v1072_v33 = vpop.f32.mrf.mxu0 }
  0xe0   : > { %v401_v35 = vmax.f32 %v350_v32, 0.0 }
  0xe1   : > { %v354_v36 = vpop.f32.mrf.mxu0 }
  0xe2   : > { %v413_v37 = vpack.c.bf16 %v401_v35, %v400_v34  ;;  %v355_v39 = vadd.f32 %v1509_v27, %v354_v36 }
  0xe3   : > { %v1075_v38 = vpop.f32.mrf.mxu0 }
  0xe4   : > { %1106 = vmatmul.mubr.msk.bf16.vlgmr.msra.gmra.mxu1 %vm459_vm2, %v413_v37  ;;  %v402_v43 = vmax.f32 %v355_v39, 0.0 }
  0xe5   : > { %v357_v40 = vpop.f32.mrf.mxu0  ;;  %1109 = vmatprep.mubr.msk.bf16.mxu1 %vm1376_vm0, %v1375_v1 }
  0xe6   : > { %v358_v41 = vadd.f32 %v1509_v27, %v357_v40 }
  0xe7   : > { %v1076_v42 = vpop.f32.mrf.mxu0 }
  0xe8   : > { %v403_v44 = vmax.f32 %v358_v41, 0.0 }
  0xe9   : > { %v362_v45 = vpop.f32.mrf.mxu0 }
  0xea   : > { %v414_v46 = vpack.c.bf16 %v403_v44, %v402_v43  ;;  %v363_v48 = vadd.f32 %v1509_v27, %v362_v45 }
  0xeb   : > { %v1079_v47 = vpop.f32.mrf.mxu0 }
  0xec   : > { %1110 = vmatmul.mubr.msk.bf16.gmra.mxu1 %vm459_vm2, %v414_v46  ;;  %v404_v52 = vmax.f32 %v363_v48, 0.0 }
  0xed   : > { %v365_v49 = vpop.f32.mrf.mxu0  ;;  %1113 = vmatprep.mubr.msk.bf16.mxu1 %vm1376_vm0, %v1375_v1 }
  0xee   : > { %v366_v50 = vadd.f32 %v1509_v27, %v365_v49 }
  0xef   : > { %v1080_v51 = vpop.f32.mrf.mxu0 }
  0xf0   : > { %v405_v53 = vmax.f32 %v366_v50, 0.0 }
  0xf1   : > { %v370_v54 = vpop.f32.mrf.mxu0 }
  0xf2   : > { %v415_v55 = vpack.c.bf16 %v405_v53, %v404_v52  ;;  %v371_v57 = vadd.f32 %v1509_v27, %v370_v54 }
  0xf3   : > { %v1083_v56 = vpop.f32.mrf.mxu0 }
  0xf4   : > { %1114 = vmatmul.mubr.msk.bf16.gmra.mxu1 %vm459_vm2, %v415_v55  ;;  %v406_v61 = vmax.f32 %v371_v57, 0.0 }
  0xf5   : > { %v373_v58 = vpop.f32.mrf.mxu0  ;;  %1117 = vmatprep.mubr.msk.bf16.mxu1 %vm1376_vm0, %v1375_v1 }
  0xf6   : > { %v374_v59 = vadd.f32 %v1509_v27, %v373_v58 }
  0xf7   : > { %v1084_v60 = vpop.f32.mrf.mxu0 }
  0xf8   : > { %v407_v62 = vmax.f32 %v374_v59, 0.0 }
  0xf9   : > { %v378_v63 = vpop.f32.mrf.mxu0 }
  0xfa   : > { %v416_v0 = vpack.c.bf16 %v407_v62, %v406_v61  ;;  %v379_v3 = vadd.f32 %v1509_v27, %v378_v63 }
  0xfb   : > { %v1087_v2 = vpop.f32.mrf.mxu0 }
  0xfc   : > { %1118 = vmatmul.mubr.msk.bf16.gmra.mxu1 %vm459_vm2, %v416_v0  ;;  %v408_v7 = vmax.f32 %v379_v3, 0.0 }
  0xfd   : > { %v381_v4 = vpop.f32.mrf.mxu0  ;;  %1121 = vmatprep.mubr.msk.bf16.mxu1 %vm1376_vm0, %v1375_v1 }
  0xfe   : > { %v382_v5 = vadd.f32 %v1509_v27, %v381_v4 }
  0xff   : > { %v1088_v6 = vpop.f32.mrf.mxu0 }
 0x100   : > { %v409_v8 = vmax.f32 %v382_v5, 0.0 }
 0x101   : > { %v386_v9 = vpop.f32.mrf.mxu0 }
 0x102   : > { %v417_v10 = vpack.c.bf16 %v409_v8, %v408_v7  ;;  %v387_v12 = vadd.f32 %v1509_v27, %v386_v9 }
 0x103   : > { %v1091_v11 = vpop.f32.mrf.mxu0 }
 0x104   : > { %1122 = vmatmul.mubr.msk.bf16.gmra.mxu1 %vm459_vm2, %v417_v10  ;;  %v410_v16 = vmax.f32 %v387_v12, 0.0 }
 0x105   : > { %v389_v13 = vpop.f32.mrf.mxu0  ;;  %1125 = vmatprep.mubr.msk.bf16.mxu1 %vm1376_vm0, %v1375_v1 }
 0x106   : > { %v390_v14 = vadd.f32 %v1509_v27, %v389_v13 }
 0x107   : > { %v1092_v15 = vpop.f32.mrf.mxu0 }
 0x108   : > { %v411_v17 = vmax.f32 %v390_v14, 0.0 }
 0x109   : > { %v394_v18 = vpop.f32.mrf.mxu0 }
 0x10a   : > { %v418_v19 = vpack.c.bf16 %v411_v17, %v410_v16  ;;  %v395_v20 = vadd.f32 %v1509_v27, %v394_v18 }
 0x10b   : > { %v1095_v21 = vpop.f32.mrf.mxu0 }
 0x10c   : > { %v412_v22 = vmax.f32 %v395_v20, 0.0  ;;  %1126 = vmatmul.mubr.msk.bf16.gmra.mxu1 %vm459_vm2, %v418_v19 }
 0x10d   : > { %v397_v23 = vpop.f32.mrf.mxu0  ;;  %1129 = vmatprep.mubr.msk.bf16.mxu1 %vm1376_vm0, %v1375_v1 }
 0x10e   : > { %v419_v25 = vpack.c.bf16 %v412_v22, %v412_v22 }
 0x10f   : > { %v1096_v24 = vpop.f32.mrf.mxu0 }
 0x114   : > { %1130 = vmatmul.mubr.msk.bf16.gmra.mxu1 %vm459_vm2, %v419_v25 }
 0x1a4   : > { %v515_v28 = vpop.f32.mrf.mxu1 }
 0x1a5   : > { %v1549_v27 = vadd.f32 %v1546_v26, %v515_v28 }
 0x1a6   : > { %v1107_v29 = vpop.f32.mrf.mxu1 }
 0x1a7   : > { %v570_v30 = vsel %vm569_vm3, %v1549_v27, -inf }
 0x1a8   : > { %571 = vmax.xlane.f32.xlu0 %v570_v30  ;;  %v518_v1 = vpop.f32.mrf.mxu1 }
 0x1a9   : > { %v1554_v31 = vadd.f32 %v1546_v26, %v518_v1 }
 0x1aa   : > { %v1108_v32 = vpop.f32.mrf.mxu1 }
 0x1ab   : > { %v573_v33 = vsel %vm569_vm3, %v1554_v31, -inf }
 0x1ac   : > { %574 = vmax.xlane.f32.xlu0 %v573_v33  ;;  %v523_v34 = vpop.f32.mrf.mxu1 }
 0x1ad   : > { %v1559_v35 = vadd.f32 %v1546_v26, %v523_v34 }
 0x1ae   : > { %v1111_v36 = vpop.f32.mrf.mxu1 }
 0x1af   : > { %v576_v37 = vsel %vm569_vm3, %v1559_v35, -inf }
 0x1b0   : > { %577 = vmax.xlane.f32.xlu1 %v576_v37  ;;  %v526_v38 = vpop.f32.mrf.mxu1 }
 0x1b1   : > { %v1564_v39 = vadd.f32 %v1546_v26, %v526_v38 }
 0x1b2   : > { %v1112_v40 = vpop.f32.mrf.mxu1 }
 0x1b3   : > { %v579_v41 = vsel %vm569_vm3, %v1564_v39, -inf }
 0x1b4   : > { %580 = vmax.xlane.f32.xlu1 %v579_v41  ;;  %v531_v42 = vpop.f32.mrf.mxu1 }
 0x1b5   : > { %v1569_v43 = vadd.f32 %v1546_v26, %v531_v42 }
 0x1b6   : > { %v1115_v44 = vpop.f32.mrf.mxu1 }
 0x1b7   : > { %v582_v45 = vsel %vm569_vm3, %v1569_v43, -inf }
 0x1b8   : > { %583 = vmax.xlane.f32.xlu0 %v582_v45  ;;  %v534_v46 = vpop.f32.mrf.mxu1 }
 0x1b9   : > { %v1574_v47 = vadd.f32 %v1546_v26, %v534_v46 }
 0x1ba   : > { %v1116_v48 = vpop.f32.mrf.mxu1 }
 0x1bb   : > { %v585_v49 = vsel %vm569_vm3, %v1574_v47, -inf }
 0x1bc   : > { %586 = vmax.xlane.f32.xlu1 %v585_v49  ;;  %v539_v50 = vpop.f32.mrf.mxu1 }
 0x1bd   : > { %v1579_v51 = vadd.f32 %v1546_v26, %v539_v50 }
 0x1be   : > { %v1119_v52 = vpop.f32.mrf.mxu1 }
 0x1bf   : > { %v588_v53 = vsel %vm569_vm3, %v1579_v51, -inf }
 0x1c0   : > { %589 = vmax.xlane.f32.xlu0 %v588_v53  ;;  %v542_v54 = vpop.f32.mrf.mxu1 }
 0x1c1   : > { %v1584_v55 = vadd.f32 %v1546_v26, %v542_v54 }
 0x1c2   : > { %v1120_v56 = vpop.f32.mrf.mxu1 }
 0x1c3   : > { %v591_v57 = vsel %vm569_vm3, %v1584_v55, -inf }
 0x1c4   : > { %592 = vmax.xlane.f32.xlu1 %v591_v57  ;;  %v547_v58 = vpop.f32.mrf.mxu1 }
 0x1c5   : > { %v1589_v59 = vadd.f32 %v1546_v26, %v547_v58 }
 0x1c6   : > { %v1123_v60 = vpop.f32.mrf.mxu1 }
 0x1c7   : > { %v594_v61 = vsel %vm569_vm3, %v1589_v59, -inf }
 0x1c8   : > { %595 = vmax.xlane.f32.xlu0 %v594_v61  ;;  %v550_v62 = vpop.f32.mrf.mxu1 }
 0x1c9   : > { %v1594_v63 = vadd.f32 %v1546_v26, %v550_v62 }
 0x1ca   : > { %v1124_v0 = vpop.f32.mrf.mxu1 }
 0x1cb   : > { %v597_v2 = vsel %vm569_vm3, %v1594_v63, -inf }
 0x1cc   : > { %598 = vmax.xlane.f32.xlu1 %v597_v2  ;;  %v555_v3 = vpop.f32.mrf.mxu1 }
 0x1cd   : > { %v1599_v4 = vadd.f32 %v1546_v26, %v555_v3 }
 0x1ce   : > { %v1127_v5 = vpop.f32.mrf.mxu1 }
 0x1cf   : > { %v600_v6 = vsel %vm569_vm3, %v1599_v4, -inf }
 0x1d0   : > { %601 = vmax.xlane.f32.xlu0 %v600_v6  ;;  %v558_v7 = vpop.f32.mrf.mxu1 }
 0x1d1   : > { %v1604_v8 = vadd.f32 %v1546_v26, %v558_v7 }
 0x1d2   : > { %v1128_v9 = vpop.f32.mrf.mxu1 }
 0x1d3   : > { %v603_v10 = vsel %vm569_vm3, %v1604_v8, -inf }
 0x1d4   : > { %604 = vmax.xlane.f32.xlu1 %v603_v10  ;;  %v563_v11 = vpop.f32.mrf.mxu1 }
 0x1d5   : > { %v1609_v12 = vadd.f32 %v1546_v26, %v563_v11 }
 0x1d6   : > { %v1131_v13 = vpop.f32.mrf.mxu1 }
 0x1d7   : > { %v606_v14 = vsel %vm569_vm3, %v1609_v12, -inf }
 0x1d8   : > { %607 = vmax.xlane.f32.xlu0 %v606_v14  ;;  %v566_v15 = vpop.f32.mrf.mxu1 }
 0x1da   : > { %v1132_v16 = vpop.f32.mrf.mxu1 }
 0x231   : > { %v572_v17 = vpop.xlane.xlu0 %571 }
 0x232   : > { %v1614_v18 = vsub.f32 %v1549_v27, %v572_v17 }
 0x234   : > { %v622_v19 = vmul.f32 1.442695, %v1614_v18 }
 0x235   : > { %v575_v20 = vpop.xlane.xlu0 %574 }
 0x236   : > { %1231 = vpow2.f32 %v622_v19  ;;  %v1618_v21 = vsub.f32 %v1554_v31, %v575_v20 }
 0x238   : > { %v624_v22 = vmul.f32 1.442695, %v1618_v21 }
 0x239   : > { %v578_v23 = vpop.xlane.xlu1 %577 }
 0x23a   : > { %1233 = vpow2.f32 %v624_v22  ;;  %v1622_v24 = vsub.f32 %v1559_v35, %v578_v23 }
 0x23c   : > { %v626_v25 = vmul.f32 1.442695, %v1622_v24 }
 0x23d   : > { %v581_v26 = vpop.xlane.xlu1 %580 }
 0x23e   : > { %1235 = vpow2.f32 %v626_v25  ;;  %v1626_v28 = vsub.f32 %v1564_v39, %v581_v26 }
 0x240   : > { %v628_v27 = vmul.f32 1.442695, %v1626_v28 }
 0x241   : > { %v584_v29 = vpop.xlane.xlu0 %583 }
 0x242   : > { %1237 = vpow2.f32 %v628_v27  ;;  %v1630_v30 = vsub.f32 %v1569_v43, %v584_v29 }
 0x243   : > { %v1232_v1 = vpop.eup %1231 }
 0x244   : > { %v630_v31 = vmul.f32 1.442695, %v1630_v30  ;;  %v648_v32 = vsel %vm569_vm3, %v1232_v1, 0.0 }
 0x245   : > { %v587_v33 = vpop.xlane.xlu1 %586  ;;  %649 = vadd.xlane.f32.xlu1 %v648_v32 }
 0x246   : > { %1239 = vpow2.f32 %v630_v31  ;;  %v1635_v34 = vsub.f32 %v1574_v47, %v587_v33 }
 0x247   : > { %v1234_v35 = vpop.eup %1233 }
 0x248   : > { %v632_v36 = vmul.f32 1.442695, %v1635_v34  ;;  %v651_v37 = vsel %vm569_vm3, %v1234_v35, 0.0 }
 0x249   : > { %v590_v38 = vpop.xlane.xlu0 %589  ;;  %652 = vadd.xlane.f32.xlu0 %v651_v37 }
 0x24a   : > { %1241 = vpow2.f32 %v632_v36  ;;  %v1640_v39 = vsub.f32 %v1579_v51, %v590_v38 }
 0x24b   : > { %v1236_v40 = vpop.eup %1235 }
 0x24c   : > { %v634_v41 = vmul.f32 1.442695, %v1640_v39  ;;  %v654_v42 = vsel %vm569_vm3, %v1236_v40, 0.0 }
 0x24d   : > { %v593_v43 = vpop.xlane.xlu1 %592  ;;  %655 = vadd.xlane.f32.xlu1 %v654_v42 }
 0x24e   : > { %1243 = vpow2.f32 %v634_v41  ;;  %v1645_v44 = vsub.f32 %v1584_v55, %v593_v43 }
 0x24f   : > { %v1238_v45 = vpop.eup %1237 }
 0x250   : > { %v636_v46 = vmul.f32 1.442695, %v1645_v44  ;;  %v657_v47 = vsel %vm569_vm3, %v1238_v45, 0.0 }
 0x251   : > { %v596_v48 = vpop.xlane.xlu0 %595  ;;  %658 = vadd.xlane.f32.xlu0 %v657_v47 }
 0x252   : > { %1245 = vpow2.f32 %v636_v46  ;;  %v1650_v49 = vsub.f32 %v1589_v59, %v596_v48 }
 0x253   : > { %v1240_v50 = vpop.eup %1239 }
 0x254   : > { %v638_v51 = vmul.f32 1.442695, %v1650_v49  ;;  %v660_v52 = vsel %vm569_vm3, %v1240_v50, 0.0 }
 0x255   : > { %v599_v53 = vpop.xlane.xlu1 %598  ;;  %661 = vadd.xlane.f32.xlu1 %v660_v52 }
 0x256   : > { %1247 = vpow2.f32 %v638_v51  ;;  %v1655_v54 = vsub.f32 %v1594_v63, %v599_v53 }
 0x257   : > { %v1242_v55 = vpop.eup %1241 }
 0x258   : > { %v640_v56 = vmul.f32 1.442695, %v1655_v54  ;;  %v663_v57 = vsel %vm569_vm3, %v1242_v55, 0.0 }
 0x259   : > { %v602_v58 = vpop.xlane.xlu0 %601  ;;  %664 = vadd.xlane.f32.xlu0 %v663_v57 }
 0x25a   : > { %1249 = vpow2.f32 %v640_v56  ;;  %v1660_v59 = vsub.f32 %v1599_v4, %v602_v58 }
 0x25b   : > { %v1244_v60 = vpop.eup %1243 }
 0x25c   : > { %v642_v61 = vmul.f32 1.442695, %v1660_v59  ;;  %v666_v62 = vsel %vm569_vm3, %v1244_v60, 0.0 }
 0x25d   : > { %667 = vadd.xlane.f32.xlu1 %v666_v62  ;;  %v605_v0 = vpop.xlane.xlu1 %604 }
 0x25e   : > { %1251 = vpow2.f32 %v642_v61  ;;  %v1665_v63 = vsub.f32 %v1604_v8, %v605_v0 }
 0x25f   : > { %v1246_v2 = vpop.eup %1245 }
 0x260   : > { %v644_v3 = vmul.f32 1.442695, %v1665_v63  ;;  %v669_v5 = vsel %vm569_vm3, %v1246_v2, 0.0 }
 0x261   : > { %670 = vadd.xlane.f32.xlu0 %v669_v5  ;;  %v608_v6 = vpop.xlane.xlu0 %607 }
 0x262   : > { %1253 = vpow2.f32 %v644_v3  ;;  %v1670_v4 = vsub.f32 %v1609_v12, %v608_v6 }
 0x263   : > { %v1248_v7 = vpop.eup %1247 }
 0x264   : > { %v646_v9 = vmul.f32 1.442695, %v1670_v4  ;;  %v672_v10 = vsel %vm569_vm3, %v1248_v7, 0.0 }
 0x265   : > { %673 = vadd.xlane.f32.xlu1 %v672_v10 }
 0x266   : > { %1255 = vpow2.f32 %v646_v9 }
 0x267   : > { %v1250_v8 = vpop.eup %1249 }
 0x268   : > { %v675_v11 = vsel %vm569_vm3, %v1250_v8, 0.0 }
 0x269   : > { %676 = vadd.xlane.f32.xlu0 %v675_v11 }
 0x26b   : > { %v1252_v13 = vpop.eup %1251 }
 0x26c   : > { %v678_v14 = vsel %vm569_vm3, %v1252_v13, 0.0 }
 0x26d   : > { %679 = vadd.xlane.f32.xlu1 %v678_v14 }
 0x26f   : > { %v1254_v15 = vpop.eup %1253 }
 0x270   : > { %v681_v12 = vsel %vm569_vm3, %v1254_v15, 0.0 }
 0x271   : > { %682 = vadd.xlane.f32.xlu0 %v681_v12 }
 0x273   : > { %v1256_v16 = vpop.eup %1255 }
 0x274   : > { %v684_v17 = vsel %vm569_vm3, %v1256_v16, 0.0 }
 0x275   : > { %685 = vadd.xlane.f32.xlu1 %v684_v17 }
 0x2ce   : > { %v650_v19 = vpop.xlane.xlu1 %649 }
 0x2cf   : > { %1257 = vlog2.f32 %v650_v19 }
 0x2d2   : > { %v653_v20 = vpop.xlane.xlu0 %652 }
 0x2d3   : > { %1259 = vlog2.f32 %v653_v20 }
 0x2d6   : > { %v656_v22 = vpop.xlane.xlu1 %655 }
 0x2d7   : > { %1261 = vlog2.f32 %v656_v22 }
 0x2da   : > { %v659_v23 = vpop.xlane.xlu0 %658 }
 0x2db   : > { %1263 = vlog2.f32 %v659_v23 }
 0x2dc   : > { %v1258_v25 = vpop.eup %1257 }
 0x2dd   : > { %v688_v26 = vmul.f32 0.6931472, %v1258_v25 }
 0x2de   : > { %v662_v27 = vpop.xlane.xlu1 %661 }
 0x2df   : > { %v713_v29 = vsub.f32 %v1614_v18, %v688_v26  ;;  %1265 = vlog2.f32 %v662_v27 }
 0x2e0   : > { %v1260_v1 = vpop.eup %1259 }
 0x2e1   : > { %726 = vst.msk [vmem:[%s1680_s8] sm:$0xff] %vm569_vm3, %v713_v29  ;;  %v690_v31 = vmul.f32 0.6931472, %v1260_v1 }
 0x2e2   : > { %v665_v32 = vpop.xlane.xlu0 %664 }
 0x2e3   : > { %v714_v33 = vsub.f32 %v1618_v21, %v690_v31  ;;  %1267 = vlog2.f32 %v665_v32 }
 0x2e4   : > { %v1262_v35 = vpop.eup %1261 }
 0x2e5   : > { %727 = vst.msk [vmem:[%s1680_s8 + $0x8] sm:$0xff] %vm569_vm3, %v714_v33  ;;  %v692_v36 = vmul.f32 0.6931472, %v1262_v35 }
 0x2e6   : > { %v668_v18 = vpop.xlane.xlu1 %667 }
 0x2e7   : > { %v715_v37 = vsub.f32 %v1622_v24, %v692_v36  ;;  %1269 = vlog2.f32 %v668_v18 }
 0x2e8   : > { %v1264_v38 = vpop.eup %1263 }
 0x2e9   : > { %728 = vst.msk [vmem:[%s1680_s8 + $0x10] sm:$0xff] %vm569_vm3, %v715_v37  ;;  %v694_v40 = vmul.f32 0.6931472, %v1264_v38 }
 0x2ea   : > { %v671_v41 = vpop.xlane.xlu0 %670 }
 0x2eb   : > { %v716_v42 = vsub.f32 %v1626_v28, %v694_v40  ;;  %1271 = vlog2.f32 %v671_v41 }
 0x2ec   : > { %v1266_v21 = vpop.eup %1265 }
 0x2ed   : > { %729 = vst.msk [vmem:[%s1680_s8 + $0x18] sm:$0xff] %vm569_vm3, %v716_v42  ;;  %v696_v43 = vmul.f32 0.6931472, %v1266_v21 }
 0x2ee   : > { %v674_v45 = vpop.xlane.xlu1 %673 }
 0x2ef   : > { %v717_v46 = vsub.f32 %v1630_v30, %v696_v43  ;;  %1273 = vlog2.f32 %v674_v45 }
 0x2f0   : > { %v1268_v24 = vpop.eup %1267 }
 0x2f1   : > { %730 = vst.msk [vmem:[%s1680_s8 + $0x20] sm:$0xff] %vm569_vm3, %v717_v46  ;;  %v698_v47 = vmul.f32 0.6931472, %v1268_v24 }
 0x2f2   : > { %v677_v48 = vpop.xlane.xlu0 %676 }
 0x2f3   : > { %v718_v50 = vsub.f32 %v1635_v34, %v698_v47  ;;  %1275 = vlog2.f32 %v677_v48 }
 0x2f4   : > { %v1270_v28 = vpop.eup %1269 }
 0x2f5   : > { %731 = vst.msk [vmem:[%s1680_s8 + $0x28] sm:$0xff] %vm569_vm3, %v718_v50  ;;  %v700_v51 = vmul.f32 0.6931472, %v1270_v28 }
 0x2f6   : > { %v680_v52 = vpop.xlane.xlu1 %679 }
 0x2f7   : > { %v719_v53 = vsub.f32 %v1640_v39, %v700_v51  ;;  %1277 = vlog2.f32 %v680_v52 }
 0x2f8   : > { %v1272_v30 = vpop.eup %1271 }
 0x2f9   : > { %732 = vst.msk [vmem:[%s1680_s8 + $0x30] sm:$0xff] %vm569_vm3, %v719_v53  ;;  %v702_v55 = vmul.f32 0.6931472, %v1272_v30 }
 0x2fa   : > { %v683_v56 = vpop.xlane.xlu0 %682 }
 0x2fb   : > { %v720_v57 = vsub.f32 %v1645_v44, %v702_v55  ;;  %1279 = vlog2.f32 %v683_v56 }
 0x2fc   : > { %v1274_v34 = vpop.eup %1273 }
 0x2fd   : > { %733 = vst.msk [vmem:[%s1680_s8 + $0x38] sm:$0xff] %vm569_vm3, %v720_v57  ;;  %v704_v58 = vmul.f32 0.6931472, %v1274_v34 }
 0x2fe   : > { %v686_v60 = vpop.xlane.xlu1 %685 }
 0x2ff   : > { %v721_v61 = vsub.f32 %v1650_v49, %v704_v58  ;;  %1281 = vlog2.f32 %v686_v60 }
 0x300   : > { %v1276_v39 = vpop.eup %1275 }
 0x301   : > { %734 = vst.msk [vmem:[%s1680_s8 + $0x40] sm:$0xff] %vm569_vm3, %v721_v61  ;;  %v706_v62 = vmul.f32 0.6931472, %v1276_v39 }
 0x303   : > { %v722_v0 = vsub.f32 %v1655_v54, %v706_v62 }
 0x304   : > { %v1278_v2 = vpop.eup %1277 }
 0x305   : > { %735 = vst.msk [vmem:[%s1680_s8 + $0x48] sm:$0xff] %vm569_vm3, %v722_v0  ;;  %v708_v44 = vmul.f32 0.6931472, %v1278_v2 }
 0x307   : > { %v723_v3 = vsub.f32 %v1660_v59, %v708_v44 }
 0x308   : > { %v1280_v5 = vpop.eup %1279 }
 0x309   : > { %736 = vst.msk [vmem:[%s1680_s8 + $0x50] sm:$0xff] %vm569_vm3, %v723_v3  ;;  %v710_v6 = vmul.f32 0.6931472, %v1280_v5 }
 0x30b   : > { %v724_v49 = vsub.f32 %v1665_v63, %v710_v6 }
 0x30c   : > { %v1282_v7 = vpop.eup %1281 }
 0x30d   : > { %737 = vst.msk [vmem:[%s1680_s8 + $0x58] sm:$0xff] %vm569_vm3, %v724_v49  ;;  %v712_v9 = vmul.f32 0.6931472, %v1282_v7  ;;  %745 = sbr.rel (!%p1432_p4) target bundleno = 839 (0x347), region = 44 }
 0x30f   : > { %v725_v10 = vsub.f32 %v1670_v4, %v712_v9 }
 0x311   : > { %738 = vst.msk [vmem:[%s1680_s8 + $0x60] sm:$0xff] %vm569_vm3, %v725_v10 }
 0x312   : > { %s1823_s18 = smov (!%p748_p8, %s747_s18), 13 }
 0x313   : > { %s1032_s13 = sshll.u32 %s1823_s18, 7 }
 0x314   : > { %p1035_p9 = scmp.eq.s32.totalorder %s1032_s13, 0 }
 0x315   : > { %1283 = sdivrem.u32 (!%p1035_p9), %s1823_s18, 13 }
 0x316   : > { %756 = sbr.rel (%p1035_p9) target bundleno = 839 (0x347), region = 48 }
 0x31e   : > { %s1733_s26 = spop.drf %1283 }
 0x31f   : > { %p1036_p10 = scmp.le.s32.totalorder %s1733_s26, 0 }
 0x320   : > { %s1816_s21 = smov (!%p1036_p10), %s1727_s12  ;;  %s1817_s6 = smov (!%p1036_p10), %s1680_s8 }
 0x321   : > { %961 = sbr.rel (%p1036_p10) target bundleno = 814 (0x32e), region = 124  ;;  %s1742_s14 = smov (!%p1036_p10), 0  }
 0x322   : > { %s1744_s15 = smov (!%p1036_p10), 0  }
 0x326 LB: >> { %v845_v54 = vld [vmem:[%s1349_s6] sm:$0xff]  ;;  %v847_v59 = vld [vmem:[%s1349_s6 + $0x8] sm:$0xff]  ;;  %v849_v63 = vld [vmem:[%s1349_s6 + $0x10] sm:$0xff]  ;;  %s871_s16 = sadd.s32 1, %s1353_s14  ;;  %s839_s15 = sadd.s32 1, %s1357_s15   ;;  %s1357_s15 = sphi %s1744_s15, %s839_s15   ;;  %s1353_s14 = sphi %s1742_s14, %s1818_s14   ;;  %s1349_s6 = sphi %s1817_s6, %s876_s6   ;;  %s1345_s21 = sphi %s1816_s21, %s877_s21  }
 0x327   : >> { %846 = vst [vmem:[%s1345_s21] sm:$0xff] %v845_v54  ;;  %848 = vst [vmem:[%s1345_s21 + $0x8] sm:$0xff] %v847_v59  ;;  %v851_v4 = vld [vmem:[%s1349_s6 + $0x18] sm:$0xff]  ;;  %v853_v8 = vld [vmem:[%s1349_s6 + $0x20] sm:$0xff]  ;;  %p872_p11 = scmp.ge.s32.totalorder %s871_s16, %s1733_s26  ;;  %p838_p12 = scmp.ge.s32.totalorder %s839_s15, %s1733_s26 }
 0x328   : >> { %850 = vst [vmem:[%s1345_s21 + $0x10] sm:$0xff] %v849_v63  ;;  %v855_v11 = vld [vmem:[%s1349_s6 + $0x28] sm:$0xff]  ;;  %852 = vst [vmem:[%s1345_s21 + $0x18] sm:$0xff] %v851_v4  ;;  %v857_v13 = vld [vmem:[%s1349_s6 + $0x30] sm:$0xff] }
 0x329   : >> { %854 = vst [vmem:[%s1345_s21 + $0x20] sm:$0xff] %v853_v8  ;;  %856 = vst [vmem:[%s1345_s21 + $0x28] sm:$0xff] %v855_v11  ;;  %v859_v14 = vld [vmem:[%s1349_s6 + $0x38] sm:$0xff]  ;;  %v861_v15 = vld [vmem:[%s1349_s6 + $0x40] sm:$0xff]  ;;  %s1825_s16 = smov (%p872_p11, %s871_s16), 0  ;;  %841 = sbr.rel (!%p838_p12) target bundleno = 806 (0x326), region = 130 }
 0x32a   : >> { %858 = vst [vmem:[%s1345_s21 + $0x30] sm:$0xff] %v857_v13  ;;  %860 = vst [vmem:[%s1345_s21 + $0x38] sm:$0xff] %v859_v14  ;;  %v863_v12 = vld [vmem:[%s1349_s6 + $0x48] sm:$0xff]  ;;  %v865_v16 = vld [vmem:[%s1349_s6 + $0x50] sm:$0xff]  ;;  %s874_s17 = smul.u32 104, %s1825_s16  ;;  %s1818_s14 = smov %s1825_s16 }
 0x32b   : >> { %862 = vst [vmem:[%s1345_s21 + $0x40] sm:$0xff] %v861_v15  ;;  %v867_v17 = vld [vmem:[%s1349_s6 + $0x58] sm:$0xff]  ;;  %864 = vst [vmem:[%s1345_s21 + $0x48] sm:$0xff] %v863_v12  ;;  %v869_v19 = vld [vmem:[%s1349_s6 + $0x60] sm:$0xff] }
 0x32c   : >> { %866 = vst [vmem:[%s1345_s21 + $0x50] sm:$0xff] %v865_v16  ;;  %868 = vst [vmem:[%s1345_s21 + $0x58] sm:$0xff] %v867_v17  ;;  %s876_s6 = scalar_lea.vmem %s1680_s8, %s874_s17 [#allocation2]  }
 0x32d   : >> { %870 = vst [vmem:[%s1345_s21 + $0x60] sm:$0xff] %v869_v19  ;;  %s877_s21 = scalar_lea.vmem %s1727_s12, %s874_s17  }
 0x32e PF: > { %1285 = sdivrem.u32 %s1823_s18, 13 }
 0x32f   : > { %s1037_s20 = smul.u32 104, %s1733_s26 }
 0x331   : > { %s882_s23 = scalar_lea.vmem %s1680_s8, %s1037_s20 [#allocation2]   ;;  %s884_s24 = scalar_lea.vmem %s1727_s12, %s1037_s20  }
 0x337   : > { %s1286_s27 = spop.drf %1285 }
 0x338   : > { %p1039_p13 = scmp.le.s32.totalorder %s1286_s27, 0 }
 0x339   : > { %s1359_s28 = smov (!%p1039_p13), %s884_s24   ;;  %s1363_s29 = smov (!%p1039_p13), %s882_s23  }
 0x33a   : > { %975 = sbr.rel (%p1039_p13) target bundleno = 839 (0x347), region = 135  ;;  %s1367_s30 = smov (!%p1039_p13), 0  }
 0x33b   : > { %s1371_s7 = smov (!%p1039_p13), 0  }
 0x33f LB: >> { %v894_v20 = vld [vmem:[%s1365_s29] sm:$0xff]  ;;  %s896_s9 = sadd.s32 1, %s1369_s30  ;;  %s888_s7 = sadd.s32 1, %s1373_s7   ;;  %s1373_s7 = sphi %s1371_s7, %s888_s7   ;;  %s1369_s30 = sphi %s1367_s30, %s1368_s30   ;;  %s1365_s29 = sphi %s1363_s29, %s901_s29   ;;  %s1361_s28 = sphi %s1359_s28, %s902_s28  }
 0x340   : >> { %895 = vst [vmem:[%s1361_s28] sm:$0xff] %v894_v20  ;;  %p897_p0 = scmp.ge.s32.totalorder %s896_s9, %s1286_s27  ;;  %p887_p1 = scmp.ge.s32.totalorder %s888_s7, %s1286_s27 }
 0x342   : >> { %s1827_s9 = smov (%p897_p0, %s896_s9), 0  ;;  %890 = sbr.rel (!%p887_p1) target bundleno = 831 (0x33f), region = 141 }
 0x343   : >> { %s1040_s8 = sshll.u32 %s1827_s9, 3  ;;  %s1368_s30 = smov %s1827_s9  }
 0x344   : >> { %s901_s29 = scalar_lea.vmem %s882_s23, %s1040_s8 [#allocation2]   ;;  %s902_s28 = scalar_lea.vmem %s884_s24, %s1040_s8  }
 0x347 PF: > { %p12_p2 = scmp.ge.s32.totalorder %s1422_s22, 4   ;;  %s1819_s18 = smov %s1337_s19 }
 0x348   : > { %s1820_s19 = smov %s1430_s25  ;;  %s1821_s20 = smov %s1422_s22 }
 0x349   :  { %14 = sbr.rel (!%p12_p2) target bundleno = 2 (0x2), region = 152 }

</bundles_post_ra>
